<compile_context>
chip_gen: v5e
topology: v5e:2x2
jax: 0.10.0
libtpu: 0.0.40
codegen_flags: <defaults>
</compile_context>

<pallas_src>
import functools

import jax
import jax.numpy as jnp
from jax.experimental import pallas as pl
from jax.experimental.pallas import tpu as pltpu

# Logical dims (NetConfig.l1 .. l4) and lane-padded dims used inside the kernel.
L1, L2, L3, L4 = 2, 200, 100, 3
L2P, L3P, L4P = 256, 128, 128


def dqnet_kernel(inv_ref, x_ref, w1_ref, b1_ref, w2_ref, b2_ref, w3_ref, b3_ref, o_ref):
    # x tile (B_TILE, 2); inv_ref is the whole-batch 1/column-norm (1, 2).
    xn = x_ref[...] * inv_ref[...]                                  # F.normalize(x, dim=0)

    # Linear(2 -> 256pad) + ReLU as two VPU broadcast-FMAs (K=2 would waste the MXU).
    h1 = (xn[:, 0:1] * w1_ref[0:1, :]
          + xn[:, 1:2] * w1_ref[1:2, :]
          + b1_ref[...])                                            # (B_TILE, 256)
    h1 = jnp.maximum(h1, 0.0)

    # Linear(256pad -> 128pad) + ReLU on the MXU.
    h2 = jnp.dot(h1, w2_ref[...], preferred_element_type=jnp.float32) + b2_ref[...]
    h2 = jnp.maximum(h2, 0.0)                                       # (B_TILE, 128)

    # Linear(128pad -> 128pad); lane-dense unmasked store, sliced to 3 in the wrapper.
    o_ref[...] = jnp.dot(h2, w3_ref[...], preferred_element_type=jnp.float32) + b3_ref[...]


def _pad2d(a, rows, cols):
    """Zero-pad a 2-D array up to (rows, cols)."""
    out = jnp.zeros((rows, cols), a.dtype)
    return out.at[: a.shape[0], : a.shape[1]].set(a)


def _pad_params(params):
    w1, b1, w2, b2, w3, b3 = params
    return (
        _pad2d(w1, L1, L2P), _pad2d(b1, 1, L2P),
        _pad2d(w2, L2P, L3P), _pad2d(b2, 1, L3P),
        _pad2d(w3, L3P, L4P), _pad2d(b3, 1, L4P),
    )


@functools.partial(jax.jit, static_argnames=("b_tile",))
def dqnet_forward(x, params, *, b_tile=128):
    """x: (B, 2) f32; params: unpadded (in, out)-layout weights + (1, out) biases."""
    B = x.shape[0]

    # Prologue: whole-batch column L2 norms (PyTorch F.normalize(x, dim=0), eps=1e-12).
    # Computed once here so tiling the batch axis stays correct.
    denom = jnp.maximum(jnp.sqrt(jnp.sum(x * x, axis=0, keepdims=True)), 1e-12)
    inv_norm = (1.0 / denom).astype(jnp.float32)                    # (1, 2)

    # Pad the batch to a multiple of the tile (padded rows are sliced off below).
    n_tiles = pl.cdiv(B, b_tile)
    b_pad = n_tiles * b_tile
    if b_pad != B:
        x = jnp.pad(x, ((0, b_pad - B), (0, 0)))

    w1p, b1p, w2p, b2p, w3p, b3p = _pad_params(params)

    const = lambda i: (0, 0)   # weights / biases / inv_norm resident across all batch tiles
    out = pl.pallas_call(
        dqnet_kernel,
        out_shape=jax.ShapeDtypeStruct((b_pad, L4P), jnp.float32),
        grid_spec=pltpu.PrefetchScalarGridSpec(
            num_scalar_prefetch=0,
            grid=(n_tiles,),
            in_specs=[
                pl.BlockSpec((1, L1), const),            # inv_norm
                pl.BlockSpec((b_tile, L1), lambda i: (i, 0)),
                pl.BlockSpec((L1, L2P), const),          # w1
                pl.BlockSpec((1, L2P), const),           # b1
                pl.BlockSpec((L2P, L3P), const),         # w2
                pl.BlockSpec((1, L3P), const),           # b2
                pl.BlockSpec((L3P, L4P), const),         # w3
                pl.BlockSpec((1, L4P), const),           # b3
            ],
            out_specs=pl.BlockSpec((b_tile, L4P), lambda i: (i, 0)),
        ),
        compiler_params=pltpu.CompilerParams(
            dimension_semantics=("parallel",),
        ),
    )(inv_norm, x, w1p, b1p, w2p, b2p, w3p, b3p)

    return out[:B, :L4]


def init_params(key):
    """Deterministic init mimicking torch.nn.Linear default (U[-1/sqrt(fan_in), ...]).
    Weights stored as (in, out) for x @ W; biases as (1, out)."""
    keys = jax.random.split(key, 6)

    def linear(kw, kb, fan_in, fan_out):
        bound = 1.0 / jnp.sqrt(float(fan_in))
        w = jax.random.uniform(kw, (fan_in, fan_out), jnp.float32, -bound, bound)
        b = jax.random.uniform(kb, (1, fan_out), jnp.float32, -bound, bound)
        return w, b

    w1, b1 = linear(keys[0], keys[1], L1, L2)
    w2, b2 = linear(keys[2], keys[3], L2, L3)
    w3, b3 = linear(keys[4], keys[5], L3, L4)
    return (w1, b1, w2, b2, w3, b3)


def reference_forward(x, params):
    """Pure-JAX reference matching the PyTorch module (unpadded)."""
    w1, b1, w2, b2, w3, b3 = params
    denom = jnp.maximum(jnp.sqrt(jnp.sum(x * x, axis=0, keepdims=True)), 1e-12)
    xn = x / denom
    h1 = jax.nn.relu(xn @ w1 + b1)
    h2 = jax.nn.relu(h1 @ w2 + b2)
    return h2 @ w3 + b3


if __name__ == "__main__":
    key = jax.random.PRNGKey(0)
    k_params, k_x = jax.random.split(key)

    params = init_params(k_params)

    # Batch of MountainCar-like states: amortizes the fixed pallas_call cost
    # over 4 grid tiles of 128 rows each.
    B = 512
    x = jax.random.normal(k_x, (B, L1), jnp.float32)

    y = dqnet_forward(x, params)
    y = jax.block_until_ready(y)

    y_ref = reference_forward(x, params)
    assert y.shape == (B, L4)
    assert jnp.allclose(y, y_ref, atol=1e-4, rtol=1e-5), "mismatch vs reference"

    print("KERNEL_OK")
</pallas_src>

<mosaic_0001>
module attributes {stable_mosaic.version = 11 : i64} {
  func.func @dqnet_kernel(%arg0: i32, %arg1: memref<1x2xf32, #tpu.memory_space<vmem>>, %arg2: memref<128x2xf32, #tpu.memory_space<vmem>>, %arg3: memref<2x256xf32, #tpu.memory_space<vmem>>, %arg4: memref<1x256xf32, #tpu.memory_space<vmem>>, %arg5: memref<256x128xf32, #tpu.memory_space<vmem>>, %arg6: memref<1x128xf32, #tpu.memory_space<vmem>>, %arg7: memref<128x128xf32, #tpu.memory_space<vmem>>, %arg8: memref<1x128xf32, #tpu.memory_space<vmem>>, %arg9: memref<128x128xf32, #tpu.memory_space<vmem>>) attributes {dimension_semantics = [#tpu.dimension_semantics<parallel>], iteration_bounds = array<i64: 4>, scalar_prefetch = 0 : i64, scratch_operands = 0 : i64, tpu.core_type = #tpu.core_type<tc>, window_params = [{pipeline_mode = #tpu.pipeline_mode<synchronous>, transform_indices = @transform_0, window_bounds = array<i64: 1, 2>}, {transform_indices = @transform_1, window_bounds = array<i64: 128, 2>}, {pipeline_mode = #tpu.pipeline_mode<synchronous>, transform_indices = @transform_2, window_bounds = array<i64: 2, 256>}, {pipeline_mode = #tpu.pipeline_mode<synchronous>, transform_indices = @transform_3, window_bounds = array<i64: 1, 256>}, {pipeline_mode = #tpu.pipeline_mode<synchronous>, transform_indices = @transform_4, window_bounds = array<i64: 256, 128>}, {pipeline_mode = #tpu.pipeline_mode<synchronous>, transform_indices = @transform_5, window_bounds = array<i64: 1, 128>}, {pipeline_mode = #tpu.pipeline_mode<synchronous>, transform_indices = @transform_6, window_bounds = array<i64: 128, 128>}, {pipeline_mode = #tpu.pipeline_mode<synchronous>, transform_indices = @transform_7, window_bounds = array<i64: 1, 128>}, {transform_indices = @transform_8, window_bounds = array<i64: 128, 128>}]} {
    %c0 = arith.constant 0 : index
    %c0_0 = arith.constant 0 : index
    %0 = vector.load %arg2[%c0, %c0_0] : memref<128x2xf32, #tpu.memory_space<vmem>>, vector<128x2xf32>
    %c0_1 = arith.constant 0 : index
    %c0_2 = arith.constant 0 : index
    %1 = vector.load %arg1[%c0_1, %c0_2] : memref<1x2xf32, #tpu.memory_space<vmem>>, vector<1x2xf32>
    %2 = vector.broadcast %1 : vector<1x2xf32> to vector<128x2xf32>
    %3 = arith.mulf %0, %2 : vector<128x2xf32>
    %4 = vector.extract_strided_slice %3 {offsets = [0, 0], sizes = [128, 1], strides = [1, 1]} : vector<128x2xf32> to vector<128x1xf32>
    %c0_3 = arith.constant 0 : index
    %c0_4 = arith.constant 0 : index
    %5 = vector.load %arg3[%c0_3, %c0_4] : memref<2x256xf32, #tpu.memory_space<vmem>>, vector<1x256xf32>
    %6 = vector.broadcast %4 : vector<128x1xf32> to vector<128x256xf32>
    %7 = vector.broadcast %5 : vector<1x256xf32> to vector<128x256xf32>
    %8 = arith.mulf %6, %7 : vector<128x256xf32>
    %9 = vector.extract_strided_slice %3 {offsets = [0, 1], sizes = [128, 1], strides = [1, 1]} : vector<128x2xf32> to vector<128x1xf32>
    %c1 = arith.constant 1 : index
    %c0_5 = arith.constant 0 : index
    %10 = vector.load %arg3[%c1, %c0_5] : memref<2x256xf32, #tpu.memory_space<vmem>>, vector<1x256xf32>
    %11 = vector.broadcast %9 : vector<128x1xf32> to vector<128x256xf32>
    %12 = vector.broadcast %10 : vector<1x256xf32> to vector<128x256xf32>
    %13 = arith.mulf %11, %12 : vector<128x256xf32>
    %14 = arith.addf %8, %13 : vector<128x256xf32>
    %c0_6 = arith.constant 0 : index
    %c0_7 = arith.constant 0 : index
    %15 = vector.load %arg4[%c0_6, %c0_7] : memref<1x256xf32, #tpu.memory_space<vmem>>, vector<1x256xf32>
    %16 = vector.broadcast %15 : vector<1x256xf32> to vector<128x256xf32>
    %17 = arith.addf %14, %16 : vector<128x256xf32>
    %cst = arith.constant 0.000000e+00 : f32
    %18 = vector.broadcast %cst : f32 to vector<128x256xf32>
    %19 = arith.maximumf %17, %18 : vector<128x256xf32>
    %c0_8 = arith.constant 0 : index
    %c0_9 = arith.constant 0 : index
    %20 = vector.load %arg5[%c0_8, %c0_9] : memref<256x128xf32, #tpu.memory_space<vmem>>, vector<256x128xf32>
    %cst_10 = arith.constant dense<0.000000e+00> : vector<128x128xf32>
    %21 = tpu.matmul %19, %20, %cst_10 {dimension_numbers = #tpu.dot_dimension_numbers<[1], [0], [0], [1], [0, 0, 1, 1], [], []>} : vector<128x256xf32>, vector<256x128xf32>, vector<128x128xf32> -> vector<128x128xf32>
    %c0_11 = arith.constant 0 : index
    %c0_12 = arith.constant 0 : index
    %22 = vector.load %arg6[%c0_11, %c0_12] : memref<1x128xf32, #tpu.memory_space<vmem>>, vector<1x128xf32>
    %23 = vector.broadcast %22 : vector<1x128xf32> to vector<128x128xf32>
    %24 = arith.addf %21, %23 : vector<128x128xf32>
    %cst_13 = arith.constant 0.000000e+00 : f32
    %25 = vector.broadcast %cst_13 : f32 to vector<128x128xf32>
    %26 = arith.maximumf %24, %25 : vector<128x128xf32>
    %c0_14 = arith.constant 0 : index
    %c0_15 = arith.constant 0 : index
    %27 = vector.load %arg7[%c0_14, %c0_15] : memref<128x128xf32, #tpu.memory_space<vmem>>, vector<128x128xf32>
    %cst_16 = arith.constant dense<0.000000e+00> : vector<128x128xf32>
    %28 = tpu.matmul %26, %27, %cst_16 {dimension_numbers = #tpu.dot_dimension_numbers<[1], [0], [0], [1], [0, 0, 1, 1], [], []>} : vector<128x128xf32>, vector<128x128xf32>, vector<128x128xf32> -> vector<128x128xf32>
    %c0_17 = arith.constant 0 : index
    %c0_18 = arith.constant 0 : index
    %29 = vector.load %arg8[%c0_17, %c0_18] : memref<1x128xf32, #tpu.memory_space<vmem>>, vector<1x128xf32>
    %30 = vector.broadcast %29 : vector<1x128xf32> to vector<128x128xf32>
    %31 = arith.addf %28, %30 : vector<128x128xf32>
    %c0_19 = arith.constant 0 : index
    %c0_20 = arith.constant 0 : index
    %32 = vector.load %arg9[%c0_19, %c0_20] : memref<128x128xf32, #tpu.memory_space<vmem>>, vector<128x128xf32>
    tpu.vector_store %arg9[%c0_19, %c0_20], %31 {strides = array<i32>} : memref<128x128xf32, #tpu.memory_space<vmem>>, vector<128x128xf32>,
    return
  }
  func.func @transform_0(%arg0: i32) -> (i32, i32) {
    %c0_i32 = arith.constant 0 : i32
    %c0_i32_0 = arith.constant 0 : i32
    %c0_i32_1 = arith.constant 0 : i32
    return %c0_i32, %c0_i32_0 : i32, i32
  }
  func.func @transform_1(%arg0: i32) -> (i32, i32) {
    %c0_i32 = arith.constant 0 : i32
    %c0_i32_0 = arith.constant 0 : i32
    return %arg0, %c0_i32 : i32, i32
  }
  func.func @transform_2(%arg0: i32) -> (i32, i32) {
    %c0_i32 = arith.constant 0 : i32
    %c0_i32_0 = arith.constant 0 : i32
    %c0_i32_1 = arith.constant 0 : i32
    return %c0_i32, %c0_i32_0 : i32, i32
  }
  func.func @transform_3(%arg0: i32) -> (i32, i32) {
    %c0_i32 = arith.constant 0 : i32
    %c0_i32_0 = arith.constant 0 : i32
    %c0_i32_1 = arith.constant 0 : i32
    return %c0_i32, %c0_i32_0 : i32, i32
  }
  func.func @transform_4(%arg0: i32) -> (i32, i32) {
    %c0_i32 = arith.constant 0 : i32
    %c0_i32_0 = arith.constant 0 : i32
    %c0_i32_1 = arith.constant 0 : i32
    return %c0_i32, %c0_i32_0 : i32, i32
  }
  func.func @transform_5(%arg0: i32) -> (i32, i32) {
    %c0_i32 = arith.constant 0 : i32
    %c0_i32_0 = arith.constant 0 : i32
    %c0_i32_1 = arith.constant 0 : i32
    return %c0_i32, %c0_i32_0 : i32, i32
  }
  func.func @transform_6(%arg0: i32) -> (i32, i32) {
    %c0_i32 = arith.constant 0 : i32
    %c0_i32_0 = arith.constant 0 : i32
    %c0_i32_1 = arith.constant 0 : i32
    return %c0_i32, %c0_i32_0 : i32, i32
  }
  func.func @transform_7(%arg0: i32) -> (i32, i32) {
    %c0_i32 = arith.constant 0 : i32
    %c0_i32_0 = arith.constant 0 : i32
    %c0_i32_1 = arith.constant 0 : i32
    return %c0_i32, %c0_i32_0 : i32, i32
  }
  func.func @transform_8(%arg0: i32) -> (i32, i32) {
    %c0_i32 = arith.constant 0 : i32
    %c0_i32_0 = arith.constant 0 : i32
    return %arg0, %c0_i32 : i32, i32
  }
}

</mosaic_0001>

<bundles_post_ra>
// kernel: dqnet_forward.1
= control target key start
LH: loop header
LB: loop body
LE: loop exit
PB: predicated region body
PF: predicated region fallthrough
CT: control target
= control target key end

     0   :  { %s1157_s27 = smov 0   ;;  %s1657_s0 = inlined_call_operand.vmem [shape: f32[1,2], index: 0, kind: input, shape index: {}]   ;;  %s1658_s1 = inlined_call_operand.vmem [shape: f32[512,2], index: 1, kind: input, shape index: {}]   ;;  %s1659_s2 = inlined_call_operand.vmem [shape: f32[2,256], index: 2, kind: input, shape index: {}]   ;;  %s1660_s3 = inlined_call_operand.vmem [shape: f32[1,256], index: 3, kind: input, shape index: {}]   ;;  %s1661_s4 = inlined_call_operand.vmem [shape: f32[256,128], index: 4, kind: input, shape index: {}]   ;;  %s1662_s5 = inlined_call_operand.vmem [shape: f32[1,128], index: 5, kind: input, shape index: {}]   ;;  %s1663_s6 = inlined_call_operand.vmem [shape: f32[128,128], index: 6, kind: input, shape index: {}]   ;;  %s1664_s7 = inlined_call_operand.vmem [shape: f32[1,128], index: 7, kind: input, shape index: {}]   ;;  %s1665_s8 = inlined_call_operand.vmem [shape: f32[512,128], index: 8, kind: output, shape index: {}]  }
   0x1 LB: > { %s1007_s28 = sadd.s32 4294967295, %s1108_s27   ;;  %p1011_p0 = scmp.ge.s32.totalorder %s1108_s27, 1  ;;  %s1108_s27 = sphi %s1157_s27, %s18_s27  }
   0x2   : > { %p263_p1 = scmp.lt.s32.totalorder %s1108_s27, 5 }
   0x4   : > { %p264_p2 = pnand %p1011_p0, %p263_p1 }
   0x5   : > { %s1012_s29 = sshll.u32 (!%p264_p2), %s1007_s28, 4 }
   0x6   : > { %267 = sbr.rel (%p264_p2) target bundleno = 512 (0x200), region = 52  ;;  %p298_p3 = scmp.lt.s32.totalorder (!%p264_p2), %s1012_s29, 63 }
   0xb   : > { %v1110_v0 = vmov 1   ;;  %v1111_v1 = vmov 0   ;;  %s1667_s29 = smov (!%p298_p3, %s1012_s29), 63  ;;  %v1173_v2 = vld [vmem:[%s1657_s0] ss:$0 sm:$0xff]  ;;  %v683_v29 = vld [vmem:[%s1661_s4 + $0x78] sm:$0xff] }
   0xc   : > { %1077 = vset.pattern.permute.xlu0 %v1110_v0  ;;  %1079 = vset.pattern.permute.xlu1 %v1111_v1  ;;  %s1013_s10 = sshll.u32 %s1667_s29, 3  ;;  %v1232_v30 = vld [vmem:[%s1661_s4 + $0xf8] sm:$0xff]  ;;  %v682_v31 = vld [vmem:[%s1661_s4 + $0x70] sm:$0xff]  ;;  %v681_v34 = vld [vmem:[%s1661_s4 + $0x68] sm:$0xff] }
   0xd   : > { %1081 = vset.pattern.permute.xlu2 %v1111_v1  ;;  %s1181_s13 = scalar_lea.vmem %s1658_s1, %s1013_s10  ;;  %704 = vmatpush.msra.mxu0 %v683_v29  ;;  %v1241_v32 = vld [vmem:[%s1661_s4 + $0xf0] sm:$0xff]  ;;  %v1251_v35 = vld [vmem:[%s1661_s4 + $0xe8] sm:$0xff]  ;;  %v680_v36 = vld [vmem:[%s1661_s4 + $0x60] sm:$0xff]  ;;  %s1636_s9 = scalar_lea.vmem %s1665_s8, %s1013_s10 }
   0xe   : > { %v310_v3 = vld [vmem:[%s1181_s13 + $0x8] sm:$0xff]  ;;  %v309_v4 = vld [vmem:[%s1181_s13] sm:$0xff]  ;;  %v311_v7 = vld [vmem:[%s1181_s13 + $0x10] sm:$0xff]  ;;  %769 = vmatpush.msra.mxu1 %v1232_v30  ;;  %1019 = vmatpush.msra.mxu3 %v683_v29 }
   0xf   : > { %v330_v5 = vmul.f32 %v1173_v2, %v310_v3  ;;  %v329_v6 = vmul.f32 %v1173_v2, %v309_v4  ;;  %v331_v8 = vmul.f32 %v1173_v2, %v311_v7  ;;  %v321_v9 = vld [vmem:[%s1181_s13 + $0x60] sm:$0xff]  ;;  %v312_v10 = vld [vmem:[%s1181_s13 + $0x18] sm:$0xff]  ;;  %v322_v13 = vld [vmem:[%s1181_s13 + $0x68] sm:$0xff]  ;;  %705 = vmatpush.msra.mxu0 %v682_v31 }
  0x10   : > { %v341_v11 = vmul.f32 %v1173_v2, %v321_v9  ;;  %v332_v12 = vmul.f32 %v1173_v2, %v312_v10  ;;  %v342_v14 = vmul.f32 %v1173_v2, %v322_v13  ;;  %v313_v15 = vld [vmem:[%s1181_s13 + $0x20] sm:$0xff]  ;;  %v315_v17 = vld [vmem:[%s1181_s13 + $0x30] sm:$0xff]  ;;  %v314_v19 = vld [vmem:[%s1181_s13 + $0x28] sm:$0xff]  ;;  %770 = vmatpush.msra.mxu1 %v1241_v32  ;;  %1020 = vmatpush.msra.mxu3 %v682_v31 }
  0x11   : > { %353 = vperm.xlu1 %1079, %v330_v5   ;;  %466 = vperm.xlu0 %1077, %v329_v6   ;;  %v333_v16 = vmul.f32 %v1173_v2, %v313_v15  ;;  %v335_v18 = vmul.f32 %v1173_v2, %v315_v17  ;;  %v316_v20 = vld [vmem:[%s1181_s13 + $0x38] sm:$0xff]  ;;  %v334_v21 = vmul.f32 %v1173_v2, %v314_v19  ;;  %v323_v23 = vld [vmem:[%s1181_s13 + $0x70] sm:$0xff]  ;;  %v317_v33 = vld [vmem:[%s1181_s13 + $0x40] sm:$0xff] }
  0x12   : > { %358 = vperm.xlu2 %1081, %v331_v8   ;;  %v336_v22 = vmul.f32 %v1173_v2, %v316_v20  ;;  %v343_v24 = vmul.f32 %v1173_v2, %v323_v23  ;;  %v324_v25 = vld [vmem:[%s1181_s13 + $0x78] sm:$0xff]  ;;  %v319_v27 = vld [vmem:[%s1181_s13 + $0x50] sm:$0xff]  ;;  %706 = vmatpush.msra.mxu0 %v681_v34  ;;  %v1261_v37 = vld [vmem:[%s1661_s4 + $0xe0] sm:$0xff]  ;;  %v337_v40 = vmul.f32 %v1173_v2, %v317_v33 }
  0x13   : > { %v344_v26 = vmul.f32 %v1173_v2, %v324_v25  ;;  %v1223_v28 = vmul.f32 %v1173_v2, %v319_v27  ;;  %771 = vmatpush.msra.mxu1 %v1251_v35  ;;  %v679_v38 = vld [vmem:[%s1661_s4 + $0x58] sm:$0xff]  ;;  %1021 = vmatpush.msra.mxu3 %v681_v34  ;;  %v678_v41 = vld [vmem:[%s1661_s4 + $0x50] sm:$0xff]  ;;  %v677_v43 = vld [vmem:[%s1661_s4 + $0x48] sm:$0xff] }
  0x14   : > { %v1269_v39 = vld [vmem:[%s1661_s4 + $0xd8] sm:$0xff]  ;;  %707 = vmatpush.msra.mxu0 %v680_v36  ;;  %v1281_v42 = vld [vmem:[%s1661_s4 + $0xd0] sm:$0xff]  ;;  %v318_v44 = vld [vmem:[%s1181_s13 + $0x48] sm:$0xff] }
  0x15   : > { %772 = vmatpush.msra.mxu1 %v1261_v37  ;;  %1022 = vmatpush.msra.mxu3 %v680_v36  ;;  %v1291_v45 = vld [vmem:[%s1661_s4 + $0xc8] sm:$0xff]  ;;  %v338_v46 = vmul.f32 %v1173_v2, %v318_v44  ;;  %v676_v47 = vld [vmem:[%s1661_s4 + $0x40] sm:$0xff]  ;;  %v675_v49 = vld [vmem:[%s1661_s4 + $0x38] sm:$0xff] }
  0x16   : > { %708 = vmatpush.msra.mxu0 %v679_v38  ;;  %v1302_v48 = vld [vmem:[%s1661_s4 + $0xc0] sm:$0xff]  ;;  %v1310_v50 = vld [vmem:[%s1661_s4 + $0xb8] sm:$0xff]  ;;  %v674_v51 = vld [vmem:[%s1661_s4 + $0x30] sm:$0xff] }
  0x17   : > { %773 = vmatpush.msra.mxu1 %v1269_v39  ;;  %1023 = vmatpush.msra.mxu3 %v679_v38  ;;  %v1319_v52 = vld [vmem:[%s1661_s4 + $0xb0] sm:$0xff]  ;;  %v673_v53 = vld [vmem:[%s1661_s4 + $0x28] sm:$0xff]  ;;  %v672_v55 = vld [vmem:[%s1661_s4 + $0x20] sm:$0xff] }
  0x18   : > { %709 = vmatpush.msra.mxu0 %v678_v41  ;;  %v1328_v54 = vld [vmem:[%s1661_s4 + $0xa8] sm:$0xff]  ;;  %v1337_v56 = vld [vmem:[%s1661_s4 + $0xa0] sm:$0xff]  ;;  %v320_v57 = vld [vmem:[%s1181_s13 + $0x58] sm:$0xff] }
  0x19   : > { %1080 = vset.pattern.permute.xlu1 %v1110_v0  ;;  %1078 = vset.pattern.permute.xlu0 %v1111_v1  ;;  %v671_v58 = vld [vmem:[%s1661_s4 + $0x18] sm:$0xff]  ;;  %v670_v60 = vld [vmem:[%s1661_s4 + $0x10] sm:$0xff]  ;;  %v340_v62 = vmul.f32 %v1173_v2, %v320_v57  ;;  %v1371_v3 = vld [vmem:[%s1661_s4 + $0x88] sm:$0xff] }
  0x1a   : > { %470 = vperm.xlu1 %1080, %v330_v5   ;;  %348 = vperm.xlu0 %1078, %v329_v6   ;;  %v1348_v59 = vld [vmem:[%s1661_s4 + $0x98] sm:$0xff]  ;;  %v1358_v61 = vld [vmem:[%s1661_s4 + $0x90] sm:$0xff]  ;;  %v668_v2 = vld [vmem:[%s1661_s4] sm:$0xff] }
  0x1b   : > { %1082 = vset.pattern.permute.xlu2 %v1110_v0  ;;  %774 = vmatpush.msra.mxu1 %v1281_v42  ;;  %v345_v9 = vld [vmem:[%s1659_s2] ss:$2 sm:$0x3] }
  0x1c   : > { %474 = vperm.xlu2 %1082, %v331_v8   ;;  %1024 = vmatpush.msra.mxu3 %v678_v41  ;;  %v1016_v8 = vld [vmem:[%s1659_s2 + $0x1] ss:$2 sm:$0x3]  ;;  %v1406_v13 = vperm.slane %v345_v9, 1 }
  0x1d   : > { %710 = vmatpush.msra.mxu0 %v677_v43  ;;  %775 = vmatpush.msra.mxu1 %v1291_v45  ;;  %v1399_v10 = vperm.slane %v1016_v8, 0 }
  0x1e   : > { %1025 = vmatpush.msra.mxu3 %v677_v43 }
  0x1f   : > { %711 = vmatpush.msra.mxu0 %v676_v47  ;;  %776 = vmatpush.msra.mxu1 %v1302_v48 }
  0x20   : > { %1026 = vmatpush.msra.mxu3 %v676_v47 }
  0x21   : > { %712 = vmatpush.msra.mxu0 %v675_v49  ;;  %777 = vmatpush.msra.mxu1 %v1310_v50 }
  0x22   : > { %1083 = vset.pattern.permute.xlu1 %v1111_v1  ;;  %408 = vperm.xlu0 %1078, %v341_v11  }
  0x23   : > { %363 = vperm.xlu1 %1083, %v332_v12   ;;  %713 = vmatpush.msra.mxu0 %v674_v51 }
  0x24   : > { %478 = vperm.xlu2 %1082, %v332_v12   ;;  %778 = vmatpush.msra.mxu1 %v1319_v52  ;;  %v1404_v12 = vperm.slane %v345_v9, 0 }
  0x25   : > { %1027 = vmatpush.msra.mxu3 %v675_v49  ;;  %714 = vmatpush.msra.mxu0 %v673_v53 }
  0x26   : > { %779 = vmatpush.msra.mxu1 %v1328_v54 }
  0x27   : > { %1028 = vmatpush.msra.mxu3 %v674_v51  ;;  %715 = vmatpush.msra.mxu0 %v672_v55 }
  0x28   : > { %780 = vmatpush.msra.mxu1 %v1337_v56 }
  0x29   : > { %1029 = vmatpush.msra.mxu3 %v673_v53  ;;  %716 = vmatpush.msra.mxu0 %v671_v58 }
  0x2a   : > { %1086 = vset.pattern.permute.xlu0 %v1110_v0  ;;  %781 = vmatpush.msra.mxu1 %v1348_v59 }
  0x2b   : > { %1084 = vset.pattern.permute.xlu1 %v1110_v0  ;;  %518 = vperm.xlu0 %1086, %v342_v14  }
  0x2c   : > { %514 = vperm.xlu1 %1084, %v341_v11   ;;  %1085 = vset.pattern.permute.xlu2 %v1111_v1  ;;  %v1401_v11 = vperm.slane %v1016_v8, 1 }
  0x2d   : > { %368 = vperm.xlu2 %1085, %v333_v16   ;;  %717 = vmatpush.msra.mxu0 %v670_v60 }
  0x2e   : > { %782 = vmatpush.msra.mxu1 %v1358_v61  ;;  %1030 = vmatpush.msra.mxu3 %v672_v55 }
  0x30   : > { %783 = vmatpush.msra.mxu1 %v1371_v3  ;;  %1031 = vmatpush.msra.mxu3 %v671_v58 }
  0x32   : > { %1032 = vmatpush.msra.mxu3 %v670_v60 }
  0x33   : > { %1089 = vset.pattern.permute.xlu0 %v1111_v1 }
  0x34   : > { %482 = vperm.xlu1 %1084, %v333_v16   ;;  %378 = vperm.xlu0 %1089, %v335_v18   ;;  %v598_v16 = vld [vmem:[%s1660_s3] sm:$0x3] }
  0x35   : > { %413 = vperm.xlu2 %1085, %v342_v14  }
  0x3c   : > { %1087 = vset.pattern.permute.xlu1 %v1111_v1  ;;  %1092 = vset.pattern.permute.xlu0 %v1110_v0 }
  0x3d   : > { %373 = vperm.xlu1 %1087, %v334_v21   ;;  %1088 = vset.pattern.permute.xlu2 %v1110_v0 }
  0x3e   : > { %486 = vperm.xlu2 %1088, %v334_v21   ;;  %494 = vperm.xlu0 %1092, %v336_v22   ;;  %v1417_v21 = vperm.slane %v598_v16, 0 }
  0x45   : > { %418 = vperm.xlu1 %1087, %v343_v24  }
  0x46   : > { %522 = vperm.xlu2 %1088, %v343_v24   ;;  %1095 = vset.pattern.permute.xlu0 %v1111_v1 }
  0x47   : > { %398 = vperm.xlu0 %1095, %v1223_v28  }
  0x4d   : > { %1090 = vset.pattern.permute.xlu1 %v1110_v0 }
  0x4e   : > { %490 = vperm.xlu1 %1090, %v335_v18   ;;  %1091 = vset.pattern.permute.xlu2 %v1111_v1 }
  0x4f   : > { %423 = vperm.xlu2 %1091, %v344_v26   ;;  %1098 = vset.pattern.permute.xlu0 %v1110_v0 }
  0x56   : > { %526 = vperm.xlu1 %1090, %v344_v26  }
  0x57   : > { %383 = vperm.xlu2 %1091, %v336_v22   ;;  %v1419_v22 = vperm.slane %v598_v16, 1 }
  0x5e   : > { %1093 = vset.pattern.permute.xlu1 %v1111_v1 }
  0x5f   : > { %388 = vperm.xlu1 %1093, %v337_v40   ;;  %1094 = vset.pattern.permute.xlu2 %v1110_v0 }
  0x60   : > { %498 = vperm.xlu2 %1094, %v337_v40  }
  0x67   : > { %393 = vperm.xlu1 %1093, %v338_v46  }
  0x68   : > { %502 = vperm.xlu2 %1094, %v338_v46  }
  0x6c   : > { %v1362_v63 = vpop.permute.xlu2 %358 }
  0x6d   : > { %v436_v38 = vmul.f32 %v1406_v13, %v1362_v63 }
  0x6f   : > { %1096 = vset.pattern.permute.xlu1 %v1110_v0  ;;  %v669_v0 = vld [vmem:[%s1661_s4 + $0x8] sm:$0xff] }
  0x70   : > { %506 = vperm.xlu1 %1096, %v1223_v28   ;;  %1097 = vset.pattern.permute.xlu2 %v1111_v1  ;;  %v1380_v1 = vld [vmem:[%s1661_s4 + $0x80] sm:$0xff] }
  0x71   : > { %403 = vperm.xlu2 %1097, %v340_v62   ;;  %718 = vmatpush.msra.mxu0 %v669_v0 }
  0x72   : > { %784 = vmatpush.msra.mxu1 %v1380_v1  ;;  %1033 = vmatpush.msra.mxu3 %v669_v0 }
  0x73   : > { %719 = vmatpush.msra.mxu0 %v668_v2 }
  0x74   : > { %1034 = vmatpush.msra.mxu3 %v668_v2 }
  0x76   : > { %v475_v4 = vpop.permute.xlu2 %474  ;;  %1035 = vmatpush.msrb.mxu3 %v1232_v30 }
  0x77   : > { %v539_v40 = vmul.f32 %v1401_v11, %v475_v4 }
  0x78   : > { %510 = vperm.xlu1 %1096, %v340_v62   ;;  %1036 = vmatpush.msrb.mxu3 %v1241_v32 }
  0x79   : > { %v571_v46 = vadd.f32 %v539_v40, %v436_v38 }
  0x7a   : > { %1037 = vmatpush.msrb.mxu3 %v1251_v35 }
  0x7c   : > { %1038 = vmatpush.msrb.mxu3 %v1261_v37  ;;  %v435_v37 = vmul.f32 %v1404_v12, %v1362_v63 }
  0x7e   : > { %1039 = vmatpush.msrb.mxu3 %v1269_v39  ;;  %v1389_v7 = vpop.permute.xlu2 %478  ;;  %v538_v39 = vmul.f32 %v1399_v10, %v475_v4 }
  0x7f   : > { %v540_v57 = vmul.f32 %v1399_v10, %v1389_v7  ;;  %v541_v58 = vmul.f32 %v1401_v11, %v1389_v7 }
  0x80   : > { %1040 = vmatpush.msrb.mxu3 %v1281_v42 }
  0x82   : > { %1041 = vmatpush.msrb.mxu3 %v1291_v45  ;;  %v570_v45 = vadd.f32 %v538_v39, %v435_v37 }
  0x83   : > { %v354_v5 = vpop.permute.xlu1 %353  ;;  %v467_v6 = vpop.permute.xlu0 %466 }
  0x84   : > { %1042 = vmatpush.msrb.mxu3 %v1302_v48  ;;  %v534_v14 = vmul.f32 %v1399_v10, %v467_v6  ;;  %v535_v15 = vmul.f32 %v1401_v11, %v467_v6  ;;  %v433_v28 = vmul.f32 %v1404_v12, %v354_v5  ;;  %v434_v29 = vmul.f32 %v1406_v13, %v354_v5 }
  0x85   : > { %v608_v51 = vadd.f32 %v1417_v21, %v570_v45 }
  0x86   : > { %1043 = vmatpush.msrb.mxu3 %v1310_v50 }
  0x87   : > { %v1421_v23 = vpop.permute.xlu2 %368  ;;  %v640_v62 = vmax.f32 %v608_v51, 0.0 }
  0x88   : > { %1044 = vmatpush.msrb.mxu3 %v1319_v52  ;;  %v609_v52 = vadd.f32 %v1419_v22, %v571_v46  ;;  %v440_v16 = vmul.f32 %v1406_v13, %v1421_v23 }
  0x8a   : > { %1045 = vmatpush.msrb.mxu3 %v1328_v54  ;;  %v641_v2 = vmax.f32 %v609_v52, 0.0 }
  0x8c   : > { %v471_v17 = vpop.permute.xlu1 %470  ;;  %v349_v18 = vpop.permute.xlu0 %348  ;;  %1046 = vmatpush.msrb.mxu3 %v1337_v56 }
  0x8d   : > { %v431_v19 = vmul.f32 %v1404_v12, %v349_v18  ;;  %v432_v20 = vmul.f32 %v1406_v13, %v349_v18  ;;  %v536_v24 = vmul.f32 %v1399_v10, %v471_v17  ;;  %v537_v25 = vmul.f32 %v1401_v11, %v471_v17 }
  0x8e   : > { %1047 = vmatpush.msrb.mxu3 %v1348_v59 }
  0x8f   : > { %v566_v26 = vadd.f32 %v534_v14, %v431_v19  ;;  %v567_v27 = vadd.f32 %v535_v15, %v432_v20  ;;  %v568_v32 = vadd.f32 %v536_v24, %v433_v28  ;;  %v569_v33 = vadd.f32 %v537_v25, %v434_v29  ;;  %v1443_v44 = vpop.permute.xlu2 %413 }
  0x90   : > { %1048 = vmatpush.msrb.mxu3 %v1358_v61  ;;  %v457_v60 = vmul.f32 %v1404_v12, %v1443_v44  ;;  %v439_v15 = vmul.f32 %v1404_v12, %v1421_v23 }
  0x91   : > { %v604_v30 = vadd.f32 %v1417_v21, %v566_v26  ;;  %v605_v31 = vadd.f32 %v1419_v22, %v567_v27  ;;  %v606_v42 = vadd.f32 %v1417_v21, %v568_v32  ;;  %v607_v43 = vadd.f32 %v1419_v22, %v569_v33 }
  0x92   : > { %1049 = vmatpush.msrb.mxu3 %v1371_v3 }
  0x93   : > { %v636_v34 = vmax.f32 %v604_v30, 0.0  ;;  %v637_v35 = vmax.f32 %v605_v31, 0.0  ;;  %v638_v47 = vmax.f32 %v606_v42, 0.0  ;;  %v639_v48 = vmax.f32 %v607_v43, 0.0 }
  0x94   : > { %v1438_v41 = vpop.permute.xlu0 %408  ;;  %1050 = vmatpush.msrb.mxu3 %v1380_v1 }
  0x95   : > { %v364_v36 = vpop.permute.xlu1 %363  ;;  %720 = vmatmul.f32.vlgmr.msra.gmra.mxu0 %v636_v34  ;;  %785 = vmatmul.f32.vlgmr.msra.gmra.mxu1 %v637_v35  ;;  %v455_v53 = vmul.f32 %v1404_v12, %v1438_v41 }
  0x96   : > { %v437_v54 = vmul.f32 %v1404_v12, %v364_v36  ;;  %v438_v55 = vmul.f32 %v1406_v13, %v364_v36 }
  0x98   : > { %v487_v63 = vpop.permute.xlu2 %486  ;;  %v572_v0 = vadd.f32 %v540_v57, %v437_v54  ;;  %v573_v3 = vadd.f32 %v541_v58, %v438_v55 }
  0x99   : > { %v544_v27 = vmul.f32 %v1399_v10, %v487_v63  ;;  %v545_v28 = vmul.f32 %v1401_v11, %v487_v63 }
  0x9a   : > { %v610_v9 = vadd.f32 %v1417_v21, %v572_v0  ;;  %v611_v14 = vadd.f32 %v1419_v22, %v573_v3 }
  0x9c   : > { %v642_v20 = vmax.f32 %v610_v9, 0.0  ;;  %v643_v24 = vmax.f32 %v611_v14, 0.0 }
  0x9d   : > { %723 = vmatmul.f32.gmra.mxu0 %v638_v47  ;;  %788 = vmatmul.f32.gmra.mxu1 %v639_v48  ;;  %v1449_v50 = vpop.permute.xlu0 %518 }
  0x9e   : > { %v1447_v49 = vpop.permute.xlu1 %514  ;;  %v560_v61 = vmul.f32 %v1399_v10, %v1449_v50 }
  0x9f   : > { %v558_v56 = vmul.f32 %v1399_v10, %v1447_v49 }
  0xa0   : > { %v592_v4 = vadd.f32 %v560_v61, %v457_v60  ;;  %v1477_v25 = vpop.permute.xlu2 %522 }
  0xa1   : > { %v590_v59 = vadd.f32 %v558_v56, %v455_v53  ;;  %v562_v43 = vmul.f32 %v1399_v10, %v1477_v25 }
  0xa2   : > { %v630_v17 = vadd.f32 %v1417_v21, %v592_v4 }
  0xa3   : > { %v628_v1 = vadd.f32 %v1417_v21, %v590_v59 }
  0xa4   : > { %v662_v26 = vmax.f32 %v630_v17, 0.0 }
  0xa5   : > { %726 = vmatmul.f32.gmra.mxu0 %v640_v62  ;;  %791 = vmatmul.f32.gmra.mxu1 %v641_v2  ;;  %v660_v5 = vmax.f32 %v628_v1, 0.0 }
  0xa6   : > { %v483_v6 = vpop.permute.xlu1 %482  ;;  %v379_v37 = vpop.permute.xlu0 %378 }
  0xa7   : > { %v542_v7 = vmul.f32 %v1399_v10, %v483_v6  ;;  %v543_v8 = vmul.f32 %v1401_v11, %v483_v6  ;;  %756 = vmatmul.f32.vlgmr.msra.gmra.mxu3 %v660_v5  ;;  %v443_v53 = vmul.f32 %v1404_v12, %v379_v37  ;;  %v444_v54 = vmul.f32 %v1406_v13, %v379_v37 }
  0xa9   : > { %v574_v18 = vadd.f32 %v542_v7, %v439_v15  ;;  %v575_v19 = vadd.f32 %v543_v8, %v440_v16  ;;  %v1485_v38 = vpop.permute.xlu2 %423  ;;  %v559_v15 = vmul.f32 %v1401_v11, %v1447_v49 }
  0xaa   : > { %v461_v9 = vmul.f32 %v1404_v12, %v1485_v38 }
  0xab   : > { %v612_v30 = vadd.f32 %v1417_v21, %v574_v18  ;;  %v613_v23 = vadd.f32 %v1419_v22, %v575_v19 }
  0xad   : > { %729 = vmatmul.f32.gmra.mxu0 %v642_v20  ;;  %794 = vmatmul.f32.gmra.mxu1 %v643_v24  ;;  %v644_v35 = vmax.f32 %v612_v30, 0.0  ;;  %v645_v36 = vmax.f32 %v613_v23, 0.0  ;;  %v456_v20 = vmul.f32 %v1406_v13, %v1438_v41  ;;  %v458_v41 = vmul.f32 %v1406_v13, %v1443_v44  ;;  %v863_v44 = vld [vmem:[%s1663_s6 + $0x68] sm:$0xff] }
  0xaf   : > { %v374_v29 = vpop.permute.xlu1 %373  ;;  %759 = vmatmul.f32.gmra.mxu3 %v662_v26  ;;  %v591_v26 = vadd.f32 %v559_v15, %v456_v20  ;;  %v856_v20 = vld [vmem:[%s1663_s6 + $0x30] sm:$0xff] }
  0xb0   : > { %v441_v31 = vmul.f32 %v1404_v12, %v374_v29  ;;  %v442_v32 = vmul.f32 %v1406_v13, %v374_v29  ;;  %v495_v55 = vpop.permute.xlu0 %494 }
  0xb1   : > { %v384_v57 = vpop.permute.xlu2 %383  ;;  %v548_v63 = vmul.f32 %v1399_v10, %v495_v55  ;;  %v549_v3 = vmul.f32 %v1401_v11, %v495_v55 }
  0xb2   : > { %v576_v33 = vadd.f32 %v544_v27, %v441_v31  ;;  %v577_v34 = vadd.f32 %v545_v28, %v442_v32  ;;  %v445_v62 = vmul.f32 %v1404_v12, %v384_v57  ;;  %v446_v0 = vmul.f32 %v1406_v13, %v384_v57 }
  0xb4   : > { %v614_v40 = vadd.f32 %v1417_v21, %v576_v33  ;;  %v615_v42 = vadd.f32 %v1419_v22, %v577_v34  ;;  %v580_v4 = vadd.f32 %v548_v63, %v445_v62  ;;  %v581_v7 = vadd.f32 %v549_v3, %v446_v0  ;;  %v860_v62 = vld [vmem:[%s1663_s6 + $0x50] sm:$0xff] }
  0xb5   : > { %732 = vmatmul.f32.gmra.mxu0 %v644_v35  ;;  %797 = vmatmul.f32.gmra.mxu1 %v645_v36  ;;  %v561_v33 = vmul.f32 %v1401_v11, %v1449_v50  ;;  %v629_v34 = vadd.f32 %v1419_v22, %v591_v26  ;;  %v865_v35 = vld [vmem:[%s1663_s6 + $0x78] sm:$0xff]  ;;  %v864_v36 = vld [vmem:[%s1663_s6 + $0x70] sm:$0xff] }
  0xb6   : > { %v646_v47 = vmax.f32 %v614_v40, 0.0  ;;  %v647_v48 = vmax.f32 %v615_v42, 0.0  ;;  %v618_v17 = vadd.f32 %v1417_v21, %v580_v4  ;;  %v619_v19 = vadd.f32 %v1419_v22, %v581_v7  ;;  %870 = vmatpush.msra.mxu2 %v865_v35  ;;  %1051 = vmatpush.msra.mxu3 %v865_v35 }
  0xb7   : > { %v1487_v39 = vpop.permute.xlu1 %418 }
  0xb8   : > { %v459_v45 = vmul.f32 %v1404_v12, %v1487_v39  ;;  %v650_v27 = vmax.f32 %v618_v17, 0.0  ;;  %v651_v23 = vmax.f32 %v619_v19, 0.0  ;;  %871 = vmatpush.msra.mxu2 %v864_v36  ;;  %1052 = vmatpush.msra.mxu3 %v864_v36 }
  0xba   : > { %v594_v46 = vadd.f32 %v562_v43, %v459_v45  ;;  %v499_v18 = vpop.permute.xlu2 %498  ;;  %v593_v45 = vadd.f32 %v561_v33, %v458_v41  ;;  %872 = vmatpush.msra.mxu2 %v863_v44  ;;  %1053 = vmatpush.msra.mxu3 %v863_v44  ;;  %v854_v33 = vld [vmem:[%s1663_s6 + $0x20] sm:$0xff] }
  0xbb   : > { %v550_v29 = vmul.f32 %v1399_v10, %v499_v18  ;;  %v551_v30 = vmul.f32 %v1401_v11, %v499_v18 }
  0xbc   : > { %v632_v51 = vadd.f32 %v1417_v21, %v594_v46  ;;  %v661_v46 = vmax.f32 %v629_v34, 0.0 }
  0xbd   : > { %735 = vmatmul.f32.gmra.mxu0 %v646_v47  ;;  %800 = vmatmul.f32.gmra.mxu1 %v647_v48 }
  0xbe   : > { %v664_v52 = vmax.f32 %v632_v51, 0.0  ;;  %v862_v51 = vld [vmem:[%s1663_s6 + $0x60] sm:$0xff] }
  0xbf   : > { %873 = vmatpush.msra.mxu2 %v862_v51  ;;  %1054 = vmatpush.msra.mxu3 %v862_v51 }
  0xc0   : > { %v491_v56 = vpop.permute.xlu1 %490  ;;  %762 = vmatmul.f32.gmra.mxu3 %v664_v52  ;;  %v460_v52 = vmul.f32 %v1406_v13, %v1487_v39  ;;  %v563_v39 = vmul.f32 %v1401_v11, %v1477_v25 }
  0xc1   : > { %v546_v58 = vmul.f32 %v1399_v10, %v491_v56  ;;  %v547_v59 = vmul.f32 %v1401_v11, %v491_v56 }
  0xc2   : > { %v503_v42 = vpop.permute.xlu2 %502  ;;  %v595_v63 = vadd.f32 %v563_v39, %v460_v52 }
  0xc3   : > { %v578_v60 = vadd.f32 %v546_v58, %v443_v53  ;;  %v579_v61 = vadd.f32 %v547_v59, %v444_v54  ;;  %v552_v53 = vmul.f32 %v1399_v10, %v503_v42  ;;  %v553_v55 = vmul.f32 %v1401_v11, %v503_v42  ;;  %v861_v58 = vld [vmem:[%s1663_s6 + $0x58] sm:$0xff] }
  0xc4   : > { %v631_v59 = vadd.f32 %v1419_v22, %v593_v45  ;;  %874 = vmatpush.msra.mxu2 %v861_v58  ;;  %1055 = vmatpush.msra.mxu3 %v861_v58  ;;  %v633_v15 = vadd.f32 %v1419_v22, %v595_v63  ;;  %v1610_v45 = vld [vmem:[%s1662_s5] ss:$0 sm:$0xff] }
  0xc5   : > { %v616_v2 = vadd.f32 %v1417_v21, %v578_v60  ;;  %v617_v1 = vadd.f32 %v1419_v22, %v579_v61 }
  0xc6   : > { %v663_v4 = vmax.f32 %v631_v59, 0.0  ;;  %875 = vmatpush.msra.mxu2 %v860_v62  ;;  %1056 = vmatpush.msra.mxu3 %v860_v62 }
  0xc7   : > { %v648_v5 = vmax.f32 %v616_v2, 0.0  ;;  %v649_v6 = vmax.f32 %v617_v1, 0.0  ;;  %v399_v2 = vpop.permute.xlu0 %398  ;;  %v859_v1 = vld [vmem:[%s1663_s6 + $0x48] sm:$0xff] }
  0xc8   : > { %v1506_v8 = vpop.permute.xlu1 %526  ;;  %v451_v7 = vmul.f32 %v1404_v12, %v399_v2  ;;  %876 = vmatpush.msra.mxu2 %v859_v1  ;;  %1057 = vmatpush.msra.mxu3 %v859_v1 }
  0xc9   : > { %v564_v14 = vmul.f32 %v1399_v10, %v1506_v8  ;;  %738 = vmatmul.f32.gmra.mxu0 %v648_v5  ;;  %803 = vmatmul.f32.gmra.mxu1 %v649_v6  ;;  %v858_v6 = vld [vmem:[%s1663_s6 + $0x40] sm:$0xff]  ;;  %v565_v17 = vmul.f32 %v1401_v11, %v1506_v8  ;;  %v855_v8 = vld [vmem:[%s1663_s6 + $0x28] sm:$0xff] }
  0xca   : > { %877 = vmatpush.msra.mxu2 %v858_v6  ;;  %1058 = vmatpush.msra.mxu3 %v858_v6 }
  0xcb   : > { %v596_v16 = vadd.f32 %v564_v14, %v461_v9  ;;  %v452_v9 = vmul.f32 %v1406_v13, %v399_v2 }
  0xcd   : > { %v634_v24 = vadd.f32 %v1417_v21, %v596_v16  ;;  %v857_v16 = vld [vmem:[%s1663_s6 + $0x38] sm:$0xff] }
  0xce   : > { %878 = vmatpush.msra.mxu2 %v857_v16  ;;  %1059 = vmatpush.msra.mxu3 %v857_v16 }
  0xcf   : > { %v666_v28 = vmax.f32 %v634_v24, 0.0  ;;  %v462_v24 = vmul.f32 %v1406_v13, %v1485_v38 }
  0xd0   : > { %879 = vmatpush.msra.mxu2 %v856_v20  ;;  %1060 = vmatpush.msra.mxu3 %v856_v20 }
  0xd1   : > { %v389_v49 = vpop.permute.xlu1 %388  ;;  %741 = vmatmul.f32.gmra.mxu0 %v650_v27  ;;  %765 = vmatmul.f32.gmra.mxu3 %v666_v28  ;;  %v404_v28 = vpop.permute.xlu2 %403 }
  0xd2   : > { %v447_v31 = vmul.f32 %v1404_v12, %v389_v49  ;;  %v448_v32 = vmul.f32 %v1406_v13, %v389_v49  ;;  %806 = vmatmul.f32.gmra.mxu1 %v651_v23  ;;  %v453_v38 = vmul.f32 %v1404_v12, %v404_v28  ;;  %880 = vmatpush.msra.mxu2 %v855_v8 }
  0xd3   : > { %1061 = vmatpush.msra.mxu3 %v855_v8 }
  0xd4   : > { %v582_v37 = vadd.f32 %v550_v29, %v447_v31  ;;  %v583_v40 = vadd.f32 %v551_v30, %v448_v32  ;;  %v597_v29 = vadd.f32 %v565_v17, %v462_v24  ;;  %v665_v30 = vmax.f32 %v633_v15, 0.0  ;;  %881 = vmatpush.msra.mxu2 %v854_v33 }
  0xd5   : > { %v454_v31 = vmul.f32 %v1406_v13, %v404_v28  ;;  %1062 = vmatpush.msra.mxu3 %v854_v33 }
  0xd6   : > { %v620_v50 = vadd.f32 %v1417_v21, %v582_v37  ;;  %v621_v43 = vadd.f32 %v1419_v22, %v583_v40  ;;  %v635_v37 = vadd.f32 %v1419_v22, %v597_v29 }
  0xd8   : > { %v652_v47 = vmax.f32 %v620_v50, 0.0  ;;  %v653_v48 = vmax.f32 %v621_v43, 0.0  ;;  %v667_v40 = vmax.f32 %v635_v37, 0.0 }
  0xd9   : > { %v394_v54 = vpop.permute.xlu1 %393  ;;  %821 = vmatmul.f32.vlgmr.msrb.gmra.mxu3 %v661_v46 }
  0xda   : > { %v449_v56 = vmul.f32 %v1404_v12, %v394_v54  ;;  %v450_v57 = vmul.f32 %v1406_v13, %v394_v54  ;;  %744 = vmatmul.f32.gmra.mxu0 %v652_v47  ;;  %809 = vmatmul.f32.gmra.mxu1 %v653_v48 }
  0xdc   : > { %v584_v60 = vadd.f32 %v552_v53, %v449_v56  ;;  %v585_v61 = vadd.f32 %v553_v55, %v450_v57 }
  0xde   : > { %v622_v0 = vadd.f32 %v1417_v21, %v584_v60  ;;  %v623_v3 = vadd.f32 %v1419_v22, %v585_v61 }
  0xe0   : > { %v654_v25 = vmax.f32 %v622_v0, 0.0  ;;  %v655_v5 = vmax.f32 %v623_v3, 0.0 }
  0xe1   : > { %824 = vmatmul.f32.gmra.mxu3 %v663_v4 }
  0xe2   : > { %v507_v14 = vpop.permute.xlu1 %506  ;;  %747 = vmatmul.f32.gmra.mxu0 %v654_v25  ;;  %812 = vmatmul.f32.gmra.mxu1 %v655_v5 }
  0xe3   : > { %v554_v18 = vmul.f32 %v1399_v10, %v507_v14  ;;  %v555_v19 = vmul.f32 %v1401_v11, %v507_v14 }
  0xe5   : > { %v586_v26 = vadd.f32 %v554_v18, %v451_v7  ;;  %v587_v27 = vadd.f32 %v555_v19, %v452_v9 }
  0xe7   : > { %v624_v23 = vadd.f32 %v1417_v21, %v586_v26  ;;  %v625_v49 = vadd.f32 %v1419_v22, %v587_v27 }
  0xe9   : > { %827 = vmatmul.f32.gmra.mxu3 %v665_v30  ;;  %v656_v32 = vmax.f32 %v624_v23, 0.0  ;;  %v657_v41 = vmax.f32 %v625_v49, 0.0 }
  0xea   : > { %v511_v34 = vpop.permute.xlu1 %510 }
  0xeb   : > { %v556_v35 = vmul.f32 %v1399_v10, %v511_v34  ;;  %v557_v36 = vmul.f32 %v1401_v11, %v511_v34  ;;  %750 = vmatmul.f32.gmra.mxu0 %v656_v32  ;;  %815 = vmatmul.f32.gmra.mxu1 %v657_v41  ;;  %v853_v10 = vld [vmem:[%s1663_s6 + $0x18] sm:$0xff]  ;;  %v852_v11 = vld [vmem:[%s1663_s6 + $0x10] sm:$0xff] }
  0xec   : > { %882 = vmatpush.msra.mxu2 %v853_v10  ;;  %1063 = vmatpush.msra.mxu3 %v853_v10 }
  0xed   : > { %v588_v12 = vadd.f32 %v556_v35, %v453_v38  ;;  %v589_v13 = vadd.f32 %v557_v36, %v454_v31 }
  0xee   : > { %883 = vmatpush.msra.mxu2 %v852_v11  ;;  %1064 = vmatpush.msra.mxu3 %v852_v11 }
  0xef   : > { %v626_v44 = vadd.f32 %v1417_v21, %v588_v12  ;;  %v627_v42 = vadd.f32 %v1419_v22, %v589_v13  ;;  %v851_v21 = vld [vmem:[%s1663_s6 + $0x8] sm:$0xff]  ;;  %v850_v22 = vld [vmem:[%s1663_s6] sm:$0xff] }
  0xf0   : > { %884 = vmatpush.msra.mxu2 %v851_v21  ;;  %1065 = vmatpush.msra.mxu3 %v851_v21 }
  0xf1   : > { %830 = vmatmul.f32.gmra.mxu3 %v667_v40  ;;  %v658_v50 = vmax.f32 %v626_v44, 0.0  ;;  %v659_v43 = vmax.f32 %v627_v42, 0.0 }
  0xf2   : > { %885 = vmatpush.msra.mxu2 %v850_v22  ;;  %1066 = vmatpush.msra.mxu3 %v850_v22 }
  0xf3   : > { %753 = vmatmul.f32.gmra.mxu0 %v658_v50  ;;  %818 = vmatmul.f32.gmra.mxu1 %v659_v43 }
 0x112   : > { %v721_v46 = vpop.f32.mrf.mxu0  ;;  %v786_v47 = vpop.f32.mrf.mxu1 }
 0x113   : > { %v722_v48 = vadd.f32 %v1610_v45, %v721_v46 }
 0x115   : > { %v787_v51 = vadd.f32 %v786_v47, %v722_v48 }
 0x117   : > { %v834_v52 = vmax.f32 %v787_v51, 0.0 }
 0x119   : > { %886 = vmatmul.f32.vlgmr.msra.gmra.mxu2 %v834_v52 }
 0x11a   : > { %v724_v53 = vpop.f32.mrf.mxu0  ;;  %v789_v54 = vpop.f32.mrf.mxu1 }
 0x11b   : > { %v725_v55 = vadd.f32 %v1610_v45, %v724_v53 }
 0x11d   : > { %v790_v56 = vadd.f32 %v789_v54, %v725_v55 }
 0x11f   : > { %v835_v57 = vmax.f32 %v790_v56, 0.0 }
 0x121   : > { %889 = vmatmul.f32.gmra.mxu2 %v835_v57 }
 0x122   : > { %v727_v58 = vpop.f32.mrf.mxu0  ;;  %v792_v59 = vpop.f32.mrf.mxu1 }
 0x123   : > { %v728_v39 = vadd.f32 %v1610_v45, %v727_v58 }
 0x125   : > { %v793_v60 = vadd.f32 %v792_v59, %v728_v39 }
 0x127   : > { %v836_v61 = vmax.f32 %v793_v60, 0.0 }
 0x129   : > { %892 = vmatmul.f32.gmra.mxu2 %v836_v61 }
 0x12a   : > { %v730_v62 = vpop.f32.mrf.mxu0  ;;  %v795_v0 = vpop.f32.mrf.mxu1 }
 0x12b   : > { %v731_v63 = vadd.f32 %v1610_v45, %v730_v62  ;;  %v757_v7 = vpop.f32.mrf.mxu3 }
 0x12c   : > { %v758_v34 = vadd.f32 %v1610_v45, %v757_v7 }
 0x12d   : > { %v796_v3 = vadd.f32 %v795_v0, %v731_v63  ;;  %v1101_v0 = vld [vmem:[%s1664_s7] ss:$0 sm:$0xff] }
 0x12f   : > { %v837_v2 = vmax.f32 %v796_v3, 0.0 }
 0x131   : > { %895 = vmatmul.f32.gmra.mxu2 %v837_v2 }
 0x132   : > { %v733_v1 = vpop.f32.mrf.mxu0  ;;  %v798_v25 = vpop.f32.mrf.mxu1 }
 0x133   : > { %v734_v4 = vadd.f32 %v1610_v45, %v733_v1  ;;  %v760_v18 = vpop.f32.mrf.mxu3 }
 0x134   : > { %v761_v50 = vadd.f32 %v1610_v45, %v760_v18 }
 0x135   : > { %v799_v5 = vadd.f32 %v798_v25, %v734_v4 }
 0x137   : > { %v838_v6 = vmax.f32 %v799_v5, 0.0 }
 0x139   : > { %898 = vmatmul.f32.gmra.mxu2 %v838_v6 }
 0x13a   : > { %v736_v9 = vpop.f32.mrf.mxu0  ;;  %v801_v15 = vpop.f32.mrf.mxu1 }
 0x13b   : > { %v737_v14 = vadd.f32 %v1610_v45, %v736_v9 }
 0x13d   : > { %v802_v16 = vadd.f32 %v801_v15, %v737_v14 }
 0x13f   : > { %v839_v17 = vmax.f32 %v802_v16, 0.0 }
 0x141   : > { %901 = vmatmul.f32.gmra.mxu2 %v839_v17 }
 0x143   : > { %v763_v28 = vpop.f32.mrf.mxu3 }
 0x144   : > { %v764_v48 = vadd.f32 %v1610_v45, %v763_v28 }
 0x146   : > { %v739_v19 = vpop.f32.mrf.mxu0  ;;  %v804_v20 = vpop.f32.mrf.mxu1 }
 0x147   : > { %v740_v24 = vadd.f32 %v1610_v45, %v739_v19 }
 0x149   : > { %v805_v26 = vadd.f32 %v804_v20, %v740_v24 }
 0x14b   : > { %v840_v27 = vmax.f32 %v805_v26, 0.0 }
 0x14d   : > { %904 = vmatmul.f32.gmra.mxu2 %v840_v27 }
 0x14e   : > { %v742_v8 = vpop.f32.mrf.mxu0 }
 0x14f   : > { %v743_v29 = vadd.f32 %v1610_v45, %v742_v8  ;;  %v807_v30 = vpop.f32.mrf.mxu1 }
 0x151   : > { %v808_v23 = vadd.f32 %v807_v30, %v743_v29 }
 0x153   : > { %v841_v49 = vmax.f32 %v808_v23, 0.0 }
 0x154   : > { %v766_v38 = vpop.f32.mrf.mxu3 }
 0x155   : > { %907 = vmatmul.f32.gmra.mxu2 %v841_v49  ;;  %v767_v59 = vadd.f32 %v1610_v45, %v766_v38 }
 0x157   : > { %v745_v31 = vpop.f32.mrf.mxu0  ;;  %v810_v32 = vpop.f32.mrf.mxu1 }
 0x158   : > { %v746_v41 = vadd.f32 %v1610_v45, %v745_v31 }
 0x15a   : > { %v811_v33 = vadd.f32 %v810_v32, %v746_v41 }
 0x15c   : > { %v842_v35 = vmax.f32 %v811_v33, 0.0  ;;  %v822_v36 = vpop.f32.mrf.mxu3 }
 0x15d   : > { %v823_v37 = vadd.f32 %v822_v36, %v758_v34 }
 0x15e   : > { %910 = vmatmul.f32.gmra.mxu2 %v842_v35 }
 0x15f   : > { %v846_v12 = vmax.f32 %v823_v37, 0.0  ;;  %v748_v13 = vpop.f32.mrf.mxu0  ;;  %v813_v40 = vpop.f32.mrf.mxu1 }
 0x160   : > { %v749_v44 = vadd.f32 %v1610_v45, %v748_v13 }
 0x161   : > { %922 = vmatmul.f32.vlgmr.msra.gmra.mxu3 %v846_v12 }
 0x162   : > { %v814_v42 = vadd.f32 %v813_v40, %v749_v44 }
 0x164   : > { %v843_v43 = vmax.f32 %v814_v42, 0.0  ;;  %v825_v10 = vpop.f32.mrf.mxu3 }
 0x165   : > { %v826_v11 = vadd.f32 %v825_v10, %v761_v50 }
 0x166   : > { %913 = vmatmul.f32.gmra.mxu2 %v843_v43 }
 0x167   : > { %v847_v21 = vmax.f32 %v826_v11, 0.0 }
 0x168   : > { %v751_v22 = vpop.f32.mrf.mxu0  ;;  %v816_v46 = vpop.f32.mrf.mxu1 }
 0x169   : > { %v752_v47 = vadd.f32 %v1610_v45, %v751_v22  ;;  %925 = vmatmul.f32.gmra.mxu3 %v847_v21 }
 0x16b   : > { %v817_v51 = vadd.f32 %v816_v46, %v752_v47 }
 0x16c   : > { %v828_v52 = vpop.f32.mrf.mxu3 }
 0x16d   : > { %v844_v53 = vmax.f32 %v817_v51, 0.0  ;;  %v829_v54 = vadd.f32 %v828_v52, %v764_v48 }
 0x16f   : > { %v848_v55 = vmax.f32 %v829_v54, 0.0  ;;  %916 = vmatmul.f32.gmra.mxu2 %v844_v53 }
 0x170   : > { %v754_v56 = vpop.f32.mrf.mxu0  ;;  %v819_v58 = vpop.f32.mrf.mxu1 }
 0x171   : > { %v755_v57 = vadd.f32 %v1610_v45, %v754_v56  ;;  %928 = vmatmul.f32.gmra.mxu3 %v848_v55 }
 0x173   : > { %v820_v39 = vadd.f32 %v819_v58, %v755_v57 }
 0x174   : > { %v831_v60 = vpop.f32.mrf.mxu3 }
 0x175   : > { %v845_v61 = vmax.f32 %v820_v39, 0.0  ;;  %v832_v62 = vadd.f32 %v831_v60, %v767_v59 }
 0x177   : > { %v849_v63 = vmax.f32 %v832_v62, 0.0  ;;  %919 = vmatmul.f32.gmra.mxu2 %v845_v61 }
 0x179   : > { %931 = vmatmul.f32.gmra.mxu3 %v849_v63 }
 0x19c   : > { %v887_v45 = vpop.f32.mrf.mxu2 }
 0x19d   : > { %v888_v3 = vadd.f32 %v1101_v0, %v887_v45 }
 0x19f   : > { %935 = vst [vmem:[%s1636_s9] sm:$0xff] %v888_v3 }
 0x1a4   : > { %v890_v2 = vpop.f32.mrf.mxu2 }
 0x1a5   : > { %v891_v1 = vadd.f32 %v1101_v0, %v890_v2 }
 0x1a7   : > { %936 = vst [vmem:[%s1636_s9 + $0x8] sm:$0xff] %v891_v1 }
 0x1ac   : > { %v893_v4 = vpop.f32.mrf.mxu2 }
 0x1ad   : > { %v894_v25 = vadd.f32 %v1101_v0, %v893_v4 }
 0x1af   : > { %937 = vst [vmem:[%s1636_s9 + $0x10] sm:$0xff] %v894_v25 }
 0x1b4   : > { %v896_v5 = vpop.f32.mrf.mxu2 }
 0x1b5   : > { %v897_v6 = vadd.f32 %v1101_v0, %v896_v5 }
 0x1b7   : > { %938 = vst [vmem:[%s1636_s9 + $0x18] sm:$0xff] %v897_v6 }
 0x1bc   : > { %v899_v7 = vpop.f32.mrf.mxu2 }
 0x1bd   : > { %v900_v9 = vadd.f32 %v1101_v0, %v899_v7 }
 0x1bf   : > { %939 = vst [vmem:[%s1636_s9 + $0x20] sm:$0xff] %v900_v9 }
 0x1c4   : > { %v902_v14 = vpop.f32.mrf.mxu2 }
 0x1c5   : > { %v903_v15 = vadd.f32 %v1101_v0, %v902_v14 }
 0x1c7   : > { %940 = vst [vmem:[%s1636_s9 + $0x28] sm:$0xff] %v903_v15 }
 0x1d0   : > { %v905_v16 = vpop.f32.mrf.mxu2 }
 0x1d1   : > { %v906_v17 = vadd.f32 %v1101_v0, %v905_v16 }
 0x1d3   : > { %941 = vst [vmem:[%s1636_s9 + $0x30] sm:$0xff] %v906_v17 }
 0x1d8   : > { %v908_v18 = vpop.f32.mrf.mxu2 }
 0x1d9   : > { %v909_v19 = vadd.f32 %v1101_v0, %v908_v18 }
 0x1db   : > { %942 = vst [vmem:[%s1636_s9 + $0x38] sm:$0xff] %v909_v19 }
 0x1e1   : > { %v911_v20 = vpop.f32.mrf.mxu2 }
 0x1e2   : > { %v912_v24 = vadd.f32 %v1101_v0, %v911_v20 }
 0x1e4   : > { %943 = vst [vmem:[%s1636_s9 + $0x40] sm:$0xff] %v912_v24  ;;  %v923_v26 = vpop.f32.mrf.mxu3 }
 0x1e5   : > { %v924_v27 = vadd.f32 %v1101_v0, %v923_v26 }
 0x1e7   : > { %947 = vst [vmem:[%s1636_s9 + $0x60] sm:$0xff] %v924_v27 }
 0x1e9   : > { %v914_v28 = vpop.f32.mrf.mxu2 }
 0x1ea   : > { %v915_v8 = vadd.f32 %v1101_v0, %v914_v28 }
 0x1ec   : > { %944 = vst [vmem:[%s1636_s9 + $0x48] sm:$0xff] %v915_v8  ;;  %v926_v29 = vpop.f32.mrf.mxu3 }
 0x1ed   : > { %v927_v30 = vadd.f32 %v1101_v0, %v926_v29 }
 0x1ef   : > { %948 = vst [vmem:[%s1636_s9 + $0x68] sm:$0xff] %v927_v30 }
 0x1f2   : > { %v917_v23 = vpop.f32.mrf.mxu2 }
 0x1f3   : > { %v918_v49 = vadd.f32 %v1101_v0, %v917_v23 }
 0x1f4   : > { %v929_v38 = vpop.f32.mrf.mxu3 }
 0x1f5   : > { %945 = vst [vmem:[%s1636_s9 + $0x50] sm:$0xff] %v918_v49  ;;  %v930_v31 = vadd.f32 %v1101_v0, %v929_v38 }
 0x1f7   : > { %949 = vst [vmem:[%s1636_s9 + $0x70] sm:$0xff] %v930_v31 }
 0x1fa   : > { %v920_v32 = vpop.f32.mrf.mxu2 }
 0x1fb   : > { %v921_v41 = vadd.f32 %v1101_v0, %v920_v32 }
 0x1fc   : > { %v932_v33 = vpop.f32.mrf.mxu3 }
 0x1fd   : > { %946 = vst [vmem:[%s1636_s9 + $0x58] sm:$0xff] %v921_v41  ;;  %v933_v34 = vadd.f32 %v1101_v0, %v932_v33 }
 0x1ff   : > { %950 = vst [vmem:[%s1636_s9 + $0x78] sm:$0xff] %v933_v34 }
 0x200 PF: > { %s18_s27 = sadd.s32 1, %s1108_s27  }
 0x201   : > { %p15_p4 = scmp.ge.s32.totalorder %s18_s27, 6  }
 0x203   :  { %17 = sbr.rel (!%p15_p4) target bundleno = 1 (0x1), region = 83 }

</bundles_post_ra>
